<compile_context>
chip_gen: v7x
topology: tpu7x:2x2x1
jax: 0.10.0
libtpu: 0.0.40
codegen_flags: <defaults>
</compile_context>

<pallas_src>
import jax
import jax.numpy as jnp
from jax.experimental import pallas as pl
from jax.experimental.pallas import tpu as pltpu

_TARGET_TILE_BYTES = 4 * 1024 * 1024   # ~4 MiB tiles -> 4x (dbl-buffered in+out) = 16 MiB live VMEM
_MAX_MERGED_COLS = 4096                # cap on the merged lane axis (elements)
_SUBLANE_BYTES = 32                    # 8 sublanes x 4 B; packed dtypes need 32/itemsize rows


# ------------------------------- Pallas kernel ------------------------------ #
def _copy_kernel(x_ref, o_ref):
    # Identity: full-tile load + full-tile (unmasked, lane-dense) store.
    o_ref[...] = x_ref[...]


# ------------------------------ tiling helpers ------------------------------ #
def _choose_2d_view(shape):
    """Pick a free (contiguous, row-major) 2-D view (rows, cols).

    Trailing dims are merged into the lane axis while the merged width stays
    moderate -- this yields a wide, lane-dense (multiple-of-128 whenever the
    shape allows) last dim so every vst is unmasked.
    """
    if len(shape) == 0:
        return 1, 1
    cols = 1
    i = len(shape)
    while i > 0 and cols * shape[i - 1] <= _MAX_MERGED_COLS:
        cols *= shape[i - 1]
        i -= 1
    if cols == 1:
        # Last dim alone exceeds the cap: take it whole (full-extent dims are
        # always legal block dims).
        # TODO(synk): pathological single rows larger than VMEM would need an
        # extra column split; not reachable for this module's feature maps.
        cols = shape[-1]
        i = len(shape) - 1
    rows = 1
    for d in shape[:i]:
        rows *= d
    return rows, cols


def _pallas_identity(x):
    """Identity on x via one in-place, tiled Pallas copy (one read, one write)."""
    if x.size == 0:
        return x

    itemsize = jnp.dtype(x.dtype).itemsize
    # Sub-32-bit dtypes pack along sublanes: bf16 needs 16-row tiles, int8/fp8 32.
    sublane_mult = max(8, _SUBLANE_BYTES // itemsize)

    rows, cols = _choose_2d_view(x.shape)
    x2d = x.reshape(rows, cols)          # contiguous reshape: metadata-only under jit

    row_bytes = cols * itemsize
    # Rows per tile: aim for ~4 MiB blocks; keep a multiple of the dtype-aware
    # sublane packing unless the block spans the full row extent (always legal).
    tile_rows = max(1, _TARGET_TILE_BYTES // max(row_bytes, 1))
    tile_rows = max(sublane_mult, (tile_rows // sublane_mult) * sublane_mult)
    if tile_rows >= rows:
        tile_rows = rows                 # single block along rows (full-extent dim)
    grid = (pl.cdiv(rows, tile_rows),)   # ragged final block handled by Pallas

    out2d = pl.pallas_call(
        _copy_kernel,
        out_shape=jax.ShapeDtypeStruct((rows, cols), x.dtype),
        grid=grid,
        in_specs=[pl.BlockSpec((tile_rows, cols), lambda i: (i, 0))],
        out_specs=pl.BlockSpec((tile_rows, cols), lambda i: (i, 0)),
        # Reuse the input HBM buffer as the output: no second allocation, and the
        # copy runs in place (XLA may elide it entirely when fused/donated).
        input_output_aliases={0: 0},
        compiler_params=pltpu.CompilerParams(
            dimension_semantics=("parallel",),      # lets v7x's 2 TCs split the grid
            vmem_limit_bytes=32 * 1024 * 1024,      # safe on v5e/v6e/v7x; 4x tile <= 16 MiB
        ),
        cost_estimate=pl.CostEstimate(
            flops=0, transcendentals=0, bytes_accessed=2 * x.size * itemsize),
    )(x2d)

    return out2d.reshape(x.shape)


# ------------------------------ module wrapper ------------------------------ #
def cyfusion_forward(x1, x2):
    """Cyfusion.forward(x1, x2) -> x1.

    x2 is accepted to match the PyTorch signature but unused, exactly like the
    reference.  The Attention sub-module holds no parameters and performs no
    computation, so there is nothing to translate for it.

    Note: the zero-cost implementation is simply `return x1`; the Pallas
    pass-through below exists because a kernel invocation is required, and it is
    made as cheap as possible (single in-place copy, no wrapper HBM passes).
    """
    del x2  # unused by the reference forward pass
    return _pallas_identity(x1)


# ----------------------------------- main ----------------------------------- #
if __name__ == "__main__":
    key = jax.random.PRNGKey(0)
    k1, k2 = jax.random.split(key)

    # Shapes consistent with Cyfusion(in1=4, in2=8) on small NCHW feature maps.
    N, IN1, IN2, H, W = 2, 4, 8, 16, 16
    x1 = jax.random.normal(k1, (N, IN1, H, W), jnp.float32)
    x2 = jax.random.normal(k2, (N, IN2, H, W), jnp.float32)

    # Donate x1 so the aliased pallas output truly runs in place (no defensive copy).
    fwd = jax.jit(cyfusion_forward, donate_argnums=(0,))
    out = jax.block_until_ready(fwd(x1, x2))

    # x1's buffer was donated; rebuild the reference deterministically from the same key.
    x1_ref = jax.random.normal(k1, (N, IN1, H, W), jnp.float32)

    assert out.shape == x1_ref.shape, out.shape
    assert out.dtype == x1_ref.dtype, out.dtype
    max_err = float(jnp.max(jnp.abs(out - x1_ref)))
    if max_err > 0.0:
        raise AssertionError(f"kernel mismatch vs reference, max abs err = {max_err}")

    print("KERNEL_OK")
</pallas_src>

<mosaic_0001>
module attributes {stable_mosaic.version = 11 : i64} {
  func.func @_copy_kernel(%arg0: i32, %arg1: memref<1x2048xf32, #tpu.memory_space<vmem>>, %arg2: memref<1x2048xf32, #tpu.memory_space<vmem>>) attributes {dimension_semantics = [#tpu.dimension_semantics<parallel>], iteration_bounds = array<i64: 1>, scalar_prefetch = 0 : i64, scratch_operands = 0 : i64, tpu.core_type = #tpu.core_type<tc>, window_params = [{transform_indices = @transform_0, window_bounds = array<i64: 1, 2048>}, {transform_indices = @transform_1, window_bounds = array<i64: 1, 2048>}]} {
    %c0 = arith.constant 0 : index
    %c0_0 = arith.constant 0 : index
    %0 = vector.load %arg1[%c0, %c0_0] : memref<1x2048xf32, #tpu.memory_space<vmem>>, vector<1x2048xf32>
    %c0_1 = arith.constant 0 : index
    %c0_2 = arith.constant 0 : index
    %1 = vector.load %arg2[%c0_1, %c0_2] : memref<1x2048xf32, #tpu.memory_space<vmem>>, vector<1x2048xf32>
    tpu.vector_store %arg2[%c0_1, %c0_2], %0 {strides = array<i32>} : memref<1x2048xf32, #tpu.memory_space<vmem>>, vector<1x2048xf32>,
    return
  }
  func.func @transform_0(%arg0: i32) -> (i32, i32) {
    %c0_i32 = arith.constant 0 : i32
    %c0_i32_0 = arith.constant 0 : i32
    return %arg0, %c0_i32 : i32, i32
  }
  func.func @transform_1(%arg0: i32) -> (i32, i32) {
    %c0_i32 = arith.constant 0 : i32
    %c0_i32_0 = arith.constant 0 : i32
    return %arg0, %c0_i32 : i32, i32
  }
}

</mosaic_0001>

<bundles_post_ra>
// kernel: cyfusion_forward.1
= control target key start
LH: loop header
LB: loop body
LE: loop exit
PB: predicated region body
PF: predicated region fallthrough
CT: control target
= control target key end

     0   :  { %s38_s0 = inlined_call_operand.vmem [shape: f32[1,2048], index: 0, kind: input, shape index: {}, may-alias: {0,1}]   ;;  %s39_s1 = inlined_call_operand.vmem [shape: f32[1,2048], index: 1, kind: output, shape index: {}, may-alias: {0,1}]  }
   0x1   :  { %v8_v0 = vld [vmem:[%s38_s0] sm:$0xff]  ;;  %v9_v1 = vld [vmem:[%s38_s0 + $0x8] sm:$0xff] }
   0x2   :  { %10 = vst [vmem:[%s39_s1] sm:$0xff] %v8_v0  ;;  %11 = vst [vmem:[%s39_s1 + $0x8] sm:$0xff] %v9_v1 }

</bundles_post_ra>
